<compile_context>
chip_gen: v6e
topology: v6e:2x2x1
jax: 0.10.0
libtpu: 0.0.40
codegen_flags: <defaults>
</compile_context>

<pallas_src>
import functools

import jax
import jax.numpy as jnp
from jax.experimental import pallas as pl
from jax.experimental.pallas import tpu as pltpu

_MIB = 1024 * 1024


# ---------------------------------------------------------------------------
# Hardware-budget helpers
# ---------------------------------------------------------------------------
def _vmem_capacity_bytes():
    """Best-effort per-core VMEM capacity; conservative 64 MiB fallback (v7x)."""
    try:
        cap = getattr(pltpu.get_tpu_info(), "vmem_capacity_bytes", None)
        if cap:
            return int(cap)
    except Exception:
        pass
    return 64 * _MIB


def _vmem_limit_bytes():
    cap = _vmem_capacity_bytes()
    # v7x-class (64 MiB/TC): leave headroom for compiler scratch.
    # v5e/v6e (128 MiB): allow larger resident blocks.
    return 48 * _MIB if cap <= 64 * _MIB else 64 * _MIB


# ---------------------------------------------------------------------------
# In-kernel reduction helpers (VPU adds; one final cross-lane reduce)
# ---------------------------------------------------------------------------
def _lane_chunk_partials(xf, t_lane):
    """(C, t_lane) -> (C, 128) partial sums via 128-lane VPU adds (t_lane % 128 == 0)."""
    part = xf[:, :128]
    for i in range(1, t_lane // 128):
        part = part + xf[:, i * 128:(i + 1) * 128]
    return part


def _lane_chunk_sum(xf, hw):
    """Sum over lanes of (C, hw); chunked VPU adds + one XLU reduce when aligned."""
    if hw % 128 == 0 and hw > 128:
        return jnp.sum(_lane_chunk_partials(xf, hw), axis=1, keepdims=True)
    return jnp.sum(xf, axis=1, keepdims=True)


# ---------------------------------------------------------------------------
# Fused single-pass kernel: one HBM read + one HBM write per image
# ---------------------------------------------------------------------------
def _scse_fused_kernel(x_ref, w1t_ref, b1_ref, w2_ref, b2_ref, ws_ref, bs_ref,
                       o_ref, *, inv_hw, hw):
    xf = x_ref[0].astype(jnp.float32)                                      # (C, HW)

    # cSE: global average pool -> Conv1x1(C->Ch) + ReLU -> Conv1x1(Ch->C) -> sigmoid
    mean = _lane_chunk_sum(xf, hw) * inv_hw                                # (C, 1)
    hid = jnp.sum(w1t_ref[...] * mean, axis=0, keepdims=True) + b1_ref[...]  # (1, Ch)
    hid = jnp.maximum(hid, 0.0)
    z = jnp.sum(w2_ref[...] * hid, axis=1, keepdims=True) + b2_ref[...]    # (C, 1)
    cse = jax.nn.sigmoid(z)                                                # (C, 1)

    # sSE: per-pixel channel contraction (VPU multiply + sublane reduce) -> sigmoid
    sse = jax.nn.sigmoid(
        jnp.sum(xf * ws_ref[...], axis=0, keepdims=True) + bs_ref[...])    # (1, HW)

    # Fused combine in f32; single cast at the store.
    o_ref[0] = (xf * (cse + sse)).astype(o_ref.dtype)


# ---------------------------------------------------------------------------
# Two-pass fallback (oversized images)
# ---------------------------------------------------------------------------
def _cse_gate_kernel(x_ref, w1t_ref, b1_ref, w2_ref, b2_ref, cse_ref, acc_ref,
                     *, inv_hw, hw, t_lane, need_mask):
    t = pl.program_id(1)

    @pl.when(t == 0)
    def _init():
        acc_ref[...] = jnp.zeros_like(acc_ref)

    xf = x_ref[0].astype(jnp.float32)                                      # (C, T)
    if need_mask:
        # Ragged spatial tail handled in-kernel (no XLA-level jnp.pad).
        lane = jax.lax.broadcasted_iota(jnp.int32, xf.shape, 1) + t * t_lane
        xf = jnp.where(lane < hw, xf, 0.0)

    # VPU-only per-tile accumulation; keeps this pass DMA-limited.
    acc_ref[...] += _lane_chunk_partials(xf, t_lane)                       # (C, 128)

    @pl.when(t == pl.num_programs(1) - 1)
    def _finalize():
        mean = jnp.sum(acc_ref[...], axis=1, keepdims=True) * inv_hw       # (C, 1)
        hid = jnp.sum(w1t_ref[...] * mean, axis=0, keepdims=True) + b1_ref[...]
        hid = jnp.maximum(hid, 0.0)
        z = jnp.sum(w2_ref[...] * hid, axis=1, keepdims=True) + b2_ref[...]
        cse_ref[0] = jax.nn.sigmoid(z)                                     # (C, 1)


def _apply_kernel(x_ref, cse_ref, ws_ref, bs_ref, o_ref):
    xf = x_ref[0].astype(jnp.float32)                                      # (C, T)
    sse = jax.nn.sigmoid(
        jnp.sum(xf * ws_ref[...], axis=0, keepdims=True) + bs_ref[...])    # (1, T)
    # f32 until the store; OOB lanes of a ragged last tile are dropped by Pallas.
    o_ref[0] = (xf * (cse_ref[0] + sse)).astype(o_ref.dtype)


def _pick_lane_tile(c, hw, dtype_bytes, vmem_limit):
    """Byte-targeted lane tile (multiple of 128) for the two-pass fallback."""
    per_lane_bytes = c * max(dtype_bytes, 4)       # f32 working copy dominates
    target_bytes = min(8 * _MIB, vmem_limit // 8)  # ~4-8 MiB blocks, gen-aware
    t = max(512, target_bytes // per_lane_bytes)
    hw128 = ((hw + 127) // 128) * 128
    t = min(t, hw128)
    return max(128, (t // 128) * 128)


# ---------------------------------------------------------------------------
# Wrapper
# ---------------------------------------------------------------------------
def scse_attention(x_nchw, params, *, force_two_pass=False, lane_tile=None):
    """x_nchw: (N, C, H, W). params: dict of kernel weights (see init_params)."""
    n, c, h, w = x_nchw.shape
    hw = h * w
    w1t, b1, w2, b2, ws, bs = (
        params["w1t"], params["b1"], params["w2"],
        params["b2"], params["ws"], params["bs"],
    )
    ch = w1t.shape[1]
    dtype_bytes = jnp.dtype(x_nchw.dtype).itemsize
    vmem_limit = _vmem_limit_bytes()

    x_flat = x_nchw.reshape(n, c, hw)   # contiguous view: no pad, no copy

    # Fused path whenever the per-image footprint (double-buffered in + out
    # blocks plus f32 temporaries) fits the per-generation VMEM budget.
    in_bytes = c * hw * dtype_bytes
    fused_footprint = 4 * in_bytes + 2 * (c * hw * 4) + 2 * _MIB
    use_fused = (not force_two_pass) and fused_footprint <= int(vmem_limit * 0.85)

    if use_fused:
        out = pl.pallas_call(
            functools.partial(_scse_fused_kernel, inv_hw=1.0 / hw, hw=hw),
            out_shape=jax.ShapeDtypeStruct((n, c, hw), x_flat.dtype),
            grid_spec=pltpu.PrefetchScalarGridSpec(
                num_scalar_prefetch=0,
                grid=(n,),
                in_specs=[
                    pl.BlockSpec((1, c, hw), lambda b: (b, 0, 0)),  # x (whole image)
                    pl.BlockSpec((c, ch), lambda b: (0, 0)),        # w1t
                    pl.BlockSpec((1, ch), lambda b: (0, 0)),        # b1
                    pl.BlockSpec((c, ch), lambda b: (0, 0)),        # w2
                    pl.BlockSpec((c, 1), lambda b: (0, 0)),         # b2
                    pl.BlockSpec((c, 1), lambda b: (0, 0)),         # ws
                    pl.BlockSpec((1, 1), lambda b: (0, 0)),         # bs
                ],
                out_specs=pl.BlockSpec((1, c, hw), lambda b: (b, 0, 0)),
            ),
            compiler_params=pltpu.CompilerParams(
                dimension_semantics=("parallel",),
                vmem_limit_bytes=vmem_limit,
            ),
        )(x_flat, w1t, b1, w2, b2, ws, bs)
        return out.reshape(n, c, h, w)

    # ---- two-pass fallback: oversized images ----
    t_lane = lane_tile if lane_tile is not None else _pick_lane_tile(
        c, hw, dtype_bytes, vmem_limit)
    n_t = pl.cdiv(hw, t_lane)
    need_mask = (hw % t_lane) != 0

    # Pass 1: per-image channel gate (N, C, 1).
    cse = pl.pallas_call(
        functools.partial(_cse_gate_kernel, inv_hw=1.0 / hw, hw=hw,
                          t_lane=t_lane, need_mask=need_mask),
        out_shape=jax.ShapeDtypeStruct((n, c, 1), jnp.float32),
        grid_spec=pltpu.PrefetchScalarGridSpec(
            num_scalar_prefetch=0,
            grid=(n, n_t),
            in_specs=[
                pl.BlockSpec((1, c, t_lane), lambda b, t: (b, 0, t)),  # x tile
                pl.BlockSpec((c, ch), lambda b, t: (0, 0)),            # w1t
                pl.BlockSpec((1, ch), lambda b, t: (0, 0)),            # b1
                pl.BlockSpec((c, ch), lambda b, t: (0, 0)),            # w2
                pl.BlockSpec((c, 1), lambda b, t: (0, 0)),             # b2
            ],
            out_specs=pl.BlockSpec((1, c, 1), lambda b, t: (b, 0, 0)),
            scratch_shapes=[pltpu.VMEM((c, 128), jnp.float32)],
        ),
        compiler_params=pltpu.CompilerParams(
            # The spatial axis must stay "arbitrary": sequential accumulation.
            dimension_semantics=("parallel", "arbitrary"),
            vmem_limit_bytes=vmem_limit,
        ),
    )(x_flat, w1t, b1, w2, b2)

    # Pass 2: streaming sSE + fused scale.
    out = pl.pallas_call(
        _apply_kernel,
        out_shape=jax.ShapeDtypeStruct((n, c, hw), x_flat.dtype),
        grid_spec=pltpu.PrefetchScalarGridSpec(
            num_scalar_prefetch=0,
            grid=(n, n_t),
            in_specs=[
                pl.BlockSpec((1, c, t_lane), lambda b, t: (b, 0, t)),  # x tile
                pl.BlockSpec((1, c, 1), lambda b, t: (b, 0, 0)),       # cse gate
                pl.BlockSpec((c, 1), lambda b, t: (0, 0)),             # ws
                pl.BlockSpec((1, 1), lambda b, t: (0, 0)),             # bs
            ],
            out_specs=pl.BlockSpec((1, c, t_lane), lambda b, t: (b, 0, t)),
        ),
        compiler_params=pltpu.CompilerParams(
            dimension_semantics=("parallel", "parallel"),
            vmem_limit_bytes=vmem_limit,
        ),
    )(x_flat, cse, ws, bs)
    return out.reshape(n, c, h, w)


# ---------------------------------------------------------------------------
# Pure-JAX reference + params
# ---------------------------------------------------------------------------
def scse_reference(x_nchw, params):
    """Pure-JAX reference matching the PyTorch SCSEModule forward."""
    w1t, b1, w2, b2, ws, bs = (
        params["w1t"], params["b1"], params["w2"],
        params["b2"], params["ws"], params["bs"],
    )
    mean = jnp.mean(x_nchw, axis=(2, 3))                       # (N, C)
    hid = jax.nn.relu(mean @ w1t + b1)                         # (N, Ch)
    cse = jax.nn.sigmoid(hid @ w2.T + b2[:, 0])                # (N, C)
    sse = jax.nn.sigmoid(
        jnp.einsum("nchw,c->nhw", x_nchw, ws[:, 0]) + bs[0, 0]
    )                                                          # (N, H, W)
    return (x_nchw * cse[:, :, None, None]
            + x_nchw * sse[:, None, :, :])


def init_params(key, in_channels, reduction=16):
    ch = max(1, in_channels // reduction)
    k = jax.random.split(key, 6)
    # Shapes mirror the PyTorch 1x1 convs (squeezed); w1 stored transposed.
    w1 = 0.1 * jax.random.normal(k[0], (ch, in_channels), jnp.float32)   # Conv2d(C, Ch, 1)
    b1 = 0.1 * jax.random.normal(k[1], (ch,), jnp.float32)
    w2 = 0.1 * jax.random.normal(k[2], (in_channels, ch), jnp.float32)   # Conv2d(Ch, C, 1)
    b2 = 0.1 * jax.random.normal(k[3], (in_channels,), jnp.float32)
    ws = 0.1 * jax.random.normal(k[4], (in_channels,), jnp.float32)      # Conv2d(C, 1, 1)
    bs = 0.1 * jax.random.normal(k[5], (), jnp.float32)
    return {
        "w1t": w1.T,                       # (C, Ch)
        "b1": b1.reshape(1, ch),           # (1, Ch)
        "w2": w2,                          # (C, Ch)
        "b2": b2.reshape(in_channels, 1),  # (C, 1)
        "ws": ws.reshape(in_channels, 1),  # (C, 1)
        "bs": bs.reshape(1, 1),            # (1, 1)
    }


if __name__ == "__main__":
    key = jax.random.PRNGKey(0)
    kx, kp = jax.random.split(key)

    # Small shapes consistent with SCSEModule(in_channels=32, reduction=16).
    N, C, H, W = 2, 32, 16, 16
    x = jax.random.normal(kx, (N, C, H, W), jnp.float32)
    params = init_params(kp, C, reduction=16)

    # Main path: fused single-pass kernel (one HBM read + one write of x).
    out = jax.block_until_ready(scse_attention(x, params))
    ref = scse_reference(x, params)
    assert out.shape == (N, C, H, W)
    assert jnp.allclose(out, ref, atol=1e-5, rtol=1e-5), "fused path mismatch"

    # Fallback path: two-pass streaming kernels, including the in-kernel
    # ragged-tail handling (hw=400 with 128-lane tiles, no jnp.pad / slice).
    x2 = jax.random.normal(kx, (N, C, 20, 20), jnp.float32)
    out2 = jax.block_until_ready(
        scse_attention(x2, params, force_two_pass=True, lane_tile=128))
    ref2 = scse_reference(x2, params)
    assert out2.shape == x2.shape
    assert jnp.allclose(out2, ref2, atol=1e-5, rtol=1e-5), "two-pass path mismatch"

    print("KERNEL_OK")
</pallas_src>

<mosaic_0001>
module attributes {stable_mosaic.version = 11 : i64} {
  func.func @_scse_fused_kernel(%arg0: i32, %arg1: memref<1x32x256xf32, #tpu.memory_space<vmem>>, %arg2: memref<32x2xf32, #tpu.memory_space<vmem>>, %arg3: memref<1x2xf32, #tpu.memory_space<vmem>>, %arg4: memref<32x2xf32, #tpu.memory_space<vmem>>, %arg5: memref<32x1xf32, #tpu.memory_space<vmem>>, %arg6: memref<32x1xf32, #tpu.memory_space<vmem>>, %arg7: memref<1x1xf32, #tpu.memory_space<vmem>>, %arg8: memref<1x32x256xf32, #tpu.memory_space<vmem>>) attributes {dimension_semantics = [#tpu.dimension_semantics<parallel>], iteration_bounds = array<i64: 2>, scalar_prefetch = 0 : i64, scratch_operands = 0 : i64, tpu.core_type = #tpu.core_type<tc>, window_params = [{transform_indices = @transform_0, window_bounds = array<i64: 1, 32, 256>}, {pipeline_mode = #tpu.pipeline_mode<synchronous>, transform_indices = @transform_1, window_bounds = array<i64: 32, 2>}, {pipeline_mode = #tpu.pipeline_mode<synchronous>, transform_indices = @transform_2, window_bounds = array<i64: 1, 2>}, {pipeline_mode = #tpu.pipeline_mode<synchronous>, transform_indices = @transform_3, window_bounds = array<i64: 32, 2>}, {pipeline_mode = #tpu.pipeline_mode<synchronous>, transform_indices = @transform_4, window_bounds = array<i64: 32, 1>}, {pipeline_mode = #tpu.pipeline_mode<synchronous>, transform_indices = @transform_5, window_bounds = array<i64: 32, 1>}, {pipeline_mode = #tpu.pipeline_mode<synchronous>, transform_indices = @transform_6, window_bounds = array<i64: 1, 1>}, {transform_indices = @transform_7, window_bounds = array<i64: 1, 32, 256>}]} {
    %c0 = arith.constant 0 : index
    %c0_0 = arith.constant 0 : index
    %c0_1 = arith.constant 0 : index
    %0 = vector.load %arg1[%c0, %c0_0, %c0_1] : memref<1x32x256xf32, #tpu.memory_space<vmem>>, vector<1x32x256xf32>
    %1 = vector.shape_cast %0 : vector<1x32x256xf32> to vector<32x256xf32>
    %2 = vector.extract_strided_slice %1 {offsets = [0, 0], sizes = [32, 128], strides = [1, 1]} : vector<32x256xf32> to vector<32x128xf32>
    %3 = vector.extract_strided_slice %1 {offsets = [0, 128], sizes = [32, 128], strides = [1, 1]} : vector<32x256xf32> to vector<32x128xf32>
    %4 = arith.addf %2, %3 : vector<32x128xf32>
    %cst = arith.constant dense<0.000000e+00> : vector<32xf32>
    %5 = vector.multi_reduction <add>, %4, %cst [1] : vector<32x128xf32> to vector<32xf32>
    %6 = vector.shape_cast %5 : vector<32xf32> to vector<32x1xf32>
    %cst_2 = arith.constant 3.906250e-03 : f32
    %7 = vector.broadcast %cst_2 : f32 to vector<32x1xf32>
    %8 = arith.mulf %6, %7 : vector<32x1xf32>
    %c0_3 = arith.constant 0 : index
    %c0_4 = arith.constant 0 : index
    %9 = vector.load %arg2[%c0_3, %c0_4] : memref<32x2xf32, #tpu.memory_space<vmem>>, vector<32x2xf32>
    %10 = vector.broadcast %8 : vector<32x1xf32> to vector<32x2xf32>
    %11 = arith.mulf %9, %10 : vector<32x2xf32>
    %cst_5 = arith.constant dense<0.000000e+00> : vector<2xf32>
    %12 = vector.multi_reduction <add>, %11, %cst_5 [0] : vector<32x2xf32> to vector<2xf32>
    %13 = vector.shape_cast %12 : vector<2xf32> to vector<1x2xf32>
    %c0_6 = arith.constant 0 : index
    %c0_7 = arith.constant 0 : index
    %14 = vector.load %arg3[%c0_6, %c0_7] : memref<1x2xf32, #tpu.memory_space<vmem>>, vector<1x2xf32>
    %15 = arith.addf %13, %14 : vector<1x2xf32>
    %cst_8 = arith.constant 0.000000e+00 : f32
    %16 = vector.broadcast %cst_8 : f32 to vector<1x2xf32>
    %17 = arith.maximumf %15, %16 : vector<1x2xf32>
    %c0_9 = arith.constant 0 : index
    %c0_10 = arith.constant 0 : index
    %18 = vector.load %arg4[%c0_9, %c0_10] : memref<32x2xf32, #tpu.memory_space<vmem>>, vector<32x2xf32>
    %19 = vector.broadcast %17 : vector<1x2xf32> to vector<32x2xf32>
    %20 = arith.mulf %18, %19 : vector<32x2xf32>
    %cst_11 = arith.constant dense<0.000000e+00> : vector<32xf32>
    %21 = vector.multi_reduction <add>, %20, %cst_11 [1] : vector<32x2xf32> to vector<32xf32>
    %22 = vector.shape_cast %21 : vector<32xf32> to vector<32x1xf32>
    %c0_12 = arith.constant 0 : index
    %c0_13 = arith.constant 0 : index
    %23 = vector.load %arg5[%c0_12, %c0_13] : memref<32x1xf32, #tpu.memory_space<vmem>>, vector<32x1xf32>
    %24 = arith.addf %22, %23 : vector<32x1xf32>
    %25 = arith.negf %24 : vector<32x1xf32>
    %26 = math.exp %25 : vector<32x1xf32>
    %cst_14 = arith.constant 1.000000e+00 : f32
    %27 = vector.broadcast %cst_14 : f32 to vector<32x1xf32>
    %28 = arith.addf %27, %26 : vector<32x1xf32>
    %29 = arith.divf %27, %28 : vector<32x1xf32>
    %c0_15 = arith.constant 0 : index
    %c0_16 = arith.constant 0 : index
    %30 = vector.load %arg6[%c0_15, %c0_16] : memref<32x1xf32, #tpu.memory_space<vmem>>, vector<32x1xf32>
    %31 = vector.broadcast %30 : vector<32x1xf32> to vector<32x256xf32>
    %32 = arith.mulf %1, %31 : vector<32x256xf32>
    %cst_17 = arith.constant dense<0.000000e+00> : vector<256xf32>
    %33 = vector.multi_reduction <add>, %32, %cst_17 [0] : vector<32x256xf32> to vector<256xf32>
    %34 = vector.shape_cast %33 : vector<256xf32> to vector<1x256xf32>
    %c0_18 = arith.constant 0 : index
    %c0_19 = arith.constant 0 : index
    %35 = vector.load %arg7[%c0_18, %c0_19] : memref<1x1xf32, #tpu.memory_space<vmem>>, vector<1x1xf32>
    %36 = vector.broadcast %35 : vector<1x1xf32> to vector<1x256xf32>
    %37 = arith.addf %34, %36 : vector<1x256xf32>
    %38 = arith.negf %37 : vector<1x256xf32>
    %39 = math.exp %38 : vector<1x256xf32>
    %cst_20 = arith.constant 1.000000e+00 : f32
    %40 = vector.broadcast %cst_20 : f32 to vector<1x256xf32>
    %41 = arith.addf %40, %39 : vector<1x256xf32>
    %42 = arith.divf %40, %41 : vector<1x256xf32>
    %43 = vector.broadcast %29 : vector<32x1xf32> to vector<32x256xf32>
    %44 = vector.broadcast %42 : vector<1x256xf32> to vector<32x256xf32>
    %45 = arith.addf %43, %44 : vector<32x256xf32>
    %46 = arith.mulf %1, %45 : vector<32x256xf32>
    %c0_21 = arith.constant 0 : index
    %c0_22 = arith.constant 0 : index
    %c0_23 = arith.constant 0 : index
    %47 = vector.load %arg8[%c0_21, %c0_22, %c0_23] : memref<1x32x256xf32, #tpu.memory_space<vmem>>, vector<1x32x256xf32>
    %48 = vector.shape_cast %47 : vector<1x32x256xf32> to vector<32x256xf32>
    %49 = vector.shape_cast %46 : vector<32x256xf32> to vector<1x32x256xf32>
    tpu.vector_store %arg8[%c0_21, %c0_22, %c0_23], %49 {strides = array<i32>} : memref<1x32x256xf32, #tpu.memory_space<vmem>>, vector<1x32x256xf32>,
    return
  }
  func.func @transform_0(%arg0: i32) -> (i32, i32, i32) {
    %c0_i32 = arith.constant 0 : i32
    %c0_i32_0 = arith.constant 0 : i32
    %c0_i32_1 = arith.constant 0 : i32
    return %arg0, %c0_i32, %c0_i32_0 : i32, i32, i32
  }
  func.func @transform_1(%arg0: i32) -> (i32, i32) {
    %c0_i32 = arith.constant 0 : i32
    %c0_i32_0 = arith.constant 0 : i32
    %c0_i32_1 = arith.constant 0 : i32
    return %c0_i32, %c0_i32_0 : i32, i32
  }
  func.func @transform_2(%arg0: i32) -> (i32, i32) {
    %c0_i32 = arith.constant 0 : i32
    %c0_i32_0 = arith.constant 0 : i32
    %c0_i32_1 = arith.constant 0 : i32
    return %c0_i32, %c0_i32_0 : i32, i32
  }
  func.func @transform_3(%arg0: i32) -> (i32, i32) {
    %c0_i32 = arith.constant 0 : i32
    %c0_i32_0 = arith.constant 0 : i32
    %c0_i32_1 = arith.constant 0 : i32
    return %c0_i32, %c0_i32_0 : i32, i32
  }
  func.func @transform_4(%arg0: i32) -> (i32, i32) {
    %c0_i32 = arith.constant 0 : i32
    %c0_i32_0 = arith.constant 0 : i32
    %c0_i32_1 = arith.constant 0 : i32
    return %c0_i32, %c0_i32_0 : i32, i32
  }
  func.func @transform_5(%arg0: i32) -> (i32, i32) {
    %c0_i32 = arith.constant 0 : i32
    %c0_i32_0 = arith.constant 0 : i32
    %c0_i32_1 = arith.constant 0 : i32
    return %c0_i32, %c0_i32_0 : i32, i32
  }
  func.func @transform_6(%arg0: i32) -> (i32, i32) {
    %c0_i32 = arith.constant 0 : i32
    %c0_i32_0 = arith.constant 0 : i32
    %c0_i32_1 = arith.constant 0 : i32
    return %c0_i32, %c0_i32_0 : i32, i32
  }
  func.func @transform_7(%arg0: i32) -> (i32, i32, i32) {
    %c0_i32 = arith.constant 0 : i32
    %c0_i32_0 = arith.constant 0 : i32
    %c0_i32_1 = arith.constant 0 : i32
    return %arg0, %c0_i32, %c0_i32_0 : i32, i32, i32
  }
}

</mosaic_0001>

<bundles_post_ra>
// kernel: tpu_custom_call.1
= control target key start
LH: loop header
LB: loop body
LE: loop exit
PB: predicated region body
PF: predicated region fallthrough
CT: control target
= control target key end

     0   :  { %s987_s0 = inlined_call_operand.vmem [shape: f32[2,32,256], index: 0, kind: input, shape index: {}]   ;;  %s988_s1 = inlined_call_operand.vmem [shape: f32[32,2], index: 1, kind: input, shape index: {}]   ;;  %s989_s2 = inlined_call_operand.vmem [shape: f32[1,2], index: 2, kind: input, shape index: {}]   ;;  %s990_s3 = inlined_call_operand.vmem [shape: f32[32,2], index: 3, kind: input, shape index: {}]   ;;  %s991_s4 = inlined_call_operand.vmem [shape: f32[32,1], index: 4, kind: input, shape index: {}]   ;;  %s992_s5 = inlined_call_operand.vmem [shape: f32[32,1], index: 5, kind: input, shape index: {}]   ;;  %s993_s6 = inlined_call_operand.<no memory space> [shape: f32[1,1], index: 6, kind: input, shape index: {}]   ;;  %s994_s7 = inlined_call_operand.hbm [shape: f32[2,32,256], index: 7, kind: output, shape index: {}]  }
   0x1   :  { %v12_v0 = vstv %s993_s6 }
   0x2   :  { %13 = vst [vmem:[#allocation2] sm:$0x1] %v12_v0 }
   0x3   :  { %14 = vsyncpa [#allocation4], 0 }
   0x4   :  { %16 = vsyncpa [#allocation4 + $0x1], 0  ;;  %s775_s26 = smov 0   ;;  %s777_s27 = smov 0  }
   0x5   :  { %s779_s28 = smov 0   ;;  %s781_s29 = smov 0  }
   0x6 LB: > { %s796_s6 = sadd.s32 4294967295, %s726_s29   ;;  %s578_s30 = sadd.s32 4294967294, %s726_s29   ;;  %s726_s29 = sphi %s781_s29, %s1000_s29   ;;  %s722_s28 = sphi %s779_s28, %s999_s28   ;;  %s718_s27 = sphi %s777_s27, %s998_s27   ;;  %s714_s26 = sphi %s775_s26, %s997_s26  }
   0x7   : > { %s800_s8 = sadd.s32 1, %s726_s29   ;;  %s181_s9 = sadd.s32 1, %s722_s28 }
   0x8   : > { %s178_s10 = ssub.s32 %s726_s29, %s800_s8  ;;  %p191_p0 = scmp.ne.s32.totalorder %s722_s28, %s718_s27 }
   0x9   : > { %p179_p1 = scmp.eq.s32.totalorder %s178_s10, 0  ;;  %p192_p2 = scmp.eq.s32.totalorder %s796_s6, 1 }
   0xa   : > { %p197_p3 = scmp.ne.s32.totalorder %s718_s27, %s714_s26  ;;  %p198_p4 = scmp.eq.s32.totalorder %s578_s30, 1 }
   0xb   : > { %s811_s11 = scalar_select %p179_p1, %s722_s28, %s181_s9  }
   0xc   : > { %p813_p5 = por %p192_p2, %p191_p0  ;;  %p817_p6 = por %p198_p4, %p197_p3 }
   0xd   : > { %p581_p7 = scmp.ge.s32.totalorder %s726_s29, 1  ;;  %p242_p8 = scmp.lt.s32.totalorder %s726_s29, 3 }
   0xf   : > { %p243_p9 = pnand %p581_p7, %p242_p8 }
  0x10   : > { %p274_p10 = scmp.lt.s32.totalorder (!%p243_p9), %s796_s6, 1  ;;  %s271_s23 = sand.u32 (!%p243_p9), 1, %s718_s27  }
  0x11   : > { %246 = sbr.rel (%p243_p9) target bundleno = 530 (0x212), region = 48  ;;  %s582_s24 = sshll.u32 (!%p243_p9), %s271_s23, 6 }
  0x12   : > { %s273_s25 = scalar_lea.vmem (!%p243_p9), [#allocation3], %s582_s24  ;;  %s597_s30 = sshll.u32 (!%p243_p9), %s796_s6, 10 }
  0x13   : > { %s516_s9 = sshll.u32 (!%p243_p9), %s273_s25, 4  ;;  %s729_s17 = smov (!%p243_p9), [#allocation3]   ;;  %s941_s9 = int_to_ptr.vmem [resolvable:$true] %s516_s9 }
  0x14   : > { %s666_s16 = scalar_lea.vmem (!%p243_p9), %s941_s9, 1024 }
  0x15   : > { %p667_p11 = scmp.ne.s32.totalorder (!%p243_p9), %s941_s9, %s666_s16 }
  0x16   : > { %s275_s14 = scalar_select %p274_p10, %s796_s6, 1  ;;  %v728_v13 = vmov 0   ;;  %v303_v17 = vld [vmem:[%s988_s1] sm:$0xff]  ;;  %v305_v19 = vld [vmem:[%s988_s1 + $0x10] sm:$0xff]  ;;  %v304_v20 = vld [vmem:[%s988_s1 + $0x8] sm:$0xff]  ;;  %vm311_vm0 = vcmask 15360   ;;  %v332_v40 = vlaneseq }
  0x17   : > { %641 = vset.pattern.permute.xlu1 %v728_v13  ;;  %640 = vset.pattern.permute.xlu0 %v728_v13  ;;  %v306_v24 = vld [vmem:[%s988_s1 + $0x18] sm:$0xff]  ;;  %v325_v44 = vld [vmem:[%s989_s2] sm:$0x1]  ;;  %v329_v49 = vld [vmem:[%s990_s3 + $0x8] sm:$0xff]  ;;  %s947_s6 = scalar_lea.sflag [#allocation4], %s271_s23  ;;  %p668_p12 = pnand %p667_p11, %p813_p5 }
  0x18   : > { %s596_s15 = sshll.u32 %s275_s14, 6  ;;  %v868_v43 = vshrl.u32 %v332_v40, 7  ;;  %v328_v50 = vld [vmem:[%s990_s3] sm:$0xff]  ;;  %v331_v52 = vld [vmem:[%s990_s3 + $0x18] sm:$0xff]  ;;  %v330_v53 = vld [vmem:[%s990_s3 + $0x10] sm:$0xff] }
  0x19   : > { %s278_s18 = scalar_lea.vmem %s987_s0, %s596_s15  ;;  %v385_v62 = vld [vmem:[%s992_s5 + $0x8] sm:$0xff]  ;;  %v386_v63 = vld [vmem:[%s992_s5 + $0x10] sm:$0xff]  ;;  %v384_v0 = vld [vmem:[%s992_s5] sm:$0xff]  ;;  %s939_s15 = scalar_lea.hbm %s994_s7, %s597_s30 }
  0x1a   : > { %v828_v1 = vld [vmem:[%s278_s18] sm:$0xff]  ;;  %v830_v2 = vld [vmem:[%s278_s18 + $0x8] sm:$0xff]  ;;  %v838_v6 = vld [vmem:[%s278_s18 + $0x10] sm:$0xff]  ;;  %v334_v47 = vsub.s32 0, %v868_v43  ;;  %p669_p13 = pneg %p668_p12 }
  0x1b   : > { %v832_v3 = vld [vmem:[%s278_s18 + $0x20] sm:$0xff]  ;;  %v287_v4 = vadd.f32 %v830_v2, %v828_v1  ;;  %v836_v5 = vld [vmem:[%s278_s18 + $0x28] sm:$0xff]  ;;  %v840_v7 = vld [vmem:[%s278_s18 + $0x18] sm:$0xff] }
  0x1c   : > { %v289_v8 = vadd.f32 %v836_v5, %v832_v3  ;;  %v844_v9 = vld [vmem:[%s278_s18 + $0x30] sm:$0xff]  ;;  %v846_v10 = vld [vmem:[%s278_s18 + $0x38] sm:$0xff]  ;;  %v288_v11 = vadd.f32 %v840_v7, %v838_v6  ;;  %s670_s18 = sshll.u32 %s729_s17, 4  ;;  %s671_s18 = int_to_ptr.vmem [resolvable:$false] %s670_s18 }
  0x1d   : > { %291 = vadd.xlane.f32.xlu0 %v287_v4  ;;  %v290_v12 = vadd.f32 %v846_v10, %v844_v9  ;;  %v387_v4 = vld [vmem:[%s992_s5 + $0x18] sm:$0xff]  ;;  %s672_s19 = scalar_lea.vmem %s671_s18, 2048  ;;  %p673_p0 = scmp.lt.s32.totalorder %s941_s9, %s671_s18 }
  0x1e   : > { %295 = vadd.xlane.f32.xlu1 %v289_v8  ;;  %v434_v8 = vld [vmem:[#allocation2] sm:$0x1]  ;;  %p674_p1 = scmp.lt.s32.totalorder %s672_s19, %s666_s16 }
  0x20   : > { %p675_p2 = por %p674_p1, %p673_p0 }
  0x21   : > { %293 = vadd.xlane.f32.xlu0 %v288_v11  ;;  %v353_v11 = vld [vmem:[%s991_s4 + $0x8] sm:$0xff] }
  0x22   : > { %297 = vadd.xlane.f32.xlu1 %v290_v12  ;;  %v352_v12 = vld [vmem:[%s991_s4] sm:$0xff]  ;;  %p676_p3 = pnand %p675_p2, %p669_p13 }
  0xa6   : > { %v292_v14 = vpop.xlane.xlu0 %291 }
  0xa7   : > { %v299_v15 = vmul.f32 0.00390625, %v292_v14  ;;  %v296_v16 = vpop.xlane.xlu1 %295 }
  0xa8   : > { %v301_v18 = vmul.f32 0.00390625, %v296_v16 }
  0xa9   : > { %v307_v22 = vmul.f32 %v303_v17, %v299_v15  ;;  %v354_v17 = vld [vmem:[%s991_s4 + $0x10] sm:$0xff] }
  0xaa   : > { %v294_v21 = vpop.xlane.xlu0 %293  ;;  %v309_v27 = vmul.f32 %v305_v19, %v301_v18 }
  0xab   : > { %v300_v23 = vmul.f32 0.00390625, %v294_v21  ;;  %v298_v25 = vpop.xlane.xlu1 %297  ;;  %v312_v30 = vsel %vm311_vm0, %v307_v22, 0.0 }
  0xac   : > { %v302_v26 = vmul.f32 0.00390625, %v298_v25  ;;  %v315_v33 = vsel %vm311_vm0, %v309_v27, 0.0 }
  0xad   : > { %v308_v28 = vmul.f32 %v304_v20, %v300_v23  ;;  %v355_v20 = vld [vmem:[%s991_s4 + $0x18] sm:$0xff] }
  0xae   : > { %v310_v29 = vmul.f32 %v306_v24, %v302_v26 }
  0xaf   : > { %v313_v31 = vsel %vm311_vm0, %v308_v28, 0.0 }
  0xb0   : > { %v314_v32 = vadd.f32 %v313_v31, %v312_v30  ;;  %v317_v34 = vsel %vm311_vm0, %v310_v29, 0.0 }
  0xb2   : > { %v316_v35 = vadd.f32 %v315_v33, %v314_v32 }
  0xb4   : > { %v318_v36 = vadd.f32 %v317_v34, %v316_v35 }
  0xb6   : > { %v319_v37 = vrot.slane %v318_v36, 4 }
  0xb8   : > { %v320_v38 = vadd.f32 %v319_v37, %v318_v36 }
  0xba   : > { %v321_v39 = vrot.slane %v320_v38, 2 }
  0xbc   : > { %v322_v41 = vadd.f32 %v321_v39, %v320_v38 }
  0xbe   : > { %v323_v42 = vrot.slane %v322_v41, 1 }
  0xc0   : > { %v324_v45 = vadd.f32 %v323_v42, %v322_v41 }
  0xc2   : > { %v326_v46 = vadd.f32 %v325_v44, %v324_v45 }
  0xc4   : > { %v327_v48 = vmax.f32 %v326_v46, 0.0 }
  0xc6   : > { %v335_v51 = vrot.slane %v327_v48, %v334_v47 }
  0xc8   : > { %v337_v54 = vmul.f32 %v335_v51, %v329_v49  ;;  %v336_v55 = vmul.f32 %v335_v51, %v328_v50  ;;  %v339_v58 = vmul.f32 %v335_v51, %v331_v52  ;;  %v338_v59 = vmul.f32 %v335_v51, %v330_v53 }
  0xca   : > { %v343_v56 = vsel %vm311_vm0, %v337_v54, 0.0  ;;  %v340_v57 = vsel %vm311_vm0, %v336_v55, 0.0  ;;  %v349_v60 = vsel %vm311_vm0, %v339_v58, 0.0  ;;  %v346_v61 = vsel %vm311_vm0, %v338_v59, 0.0 }
  0xcb   : > { %344 = vadd.xlane.f32.xlu1 %v343_v56  ;;  %341 = vadd.xlane.f32.xlu0 %v340_v57 }
  0xcf   : > { %350 = vadd.xlane.f32.xlu1 %v349_v60  ;;  %347 = vadd.xlane.f32.xlu0 %v346_v61 }
  0xe0   : > { %395 = vperm.xlu1 %641, %v385_v62  }
  0xe4   : > { %400 = vperm.xlu1 %641, %v386_v63  }
  0xe5   : > { %390 = vperm.xlu0 %640, %v384_v0  }
  0xe8   : > { %405 = vperm.xlu1 %641, %v387_v4  }
  0xec   : > { %437 = vperm.xlu1 %641, %v434_v8  }
 0x154   : > { %v345_v13 = vpop.xlane.xlu1 %344  ;;  %v342_v14 = vpop.xlane.xlu0 %341 }
 0x155   : > { %v357_v15 = vadd.f32 %v353_v11, %v345_v13  ;;  %v356_v16 = vadd.f32 %v352_v12, %v342_v14 }
 0x157   : > { %v586_v18 = vmul.f32 -1.442695, %v357_v15  ;;  %v585_v19 = vmul.f32 -1.442695, %v356_v16 }
 0x158   : > { %v351_v21 = vpop.xlane.xlu1 %350  ;;  %v348_v22 = vpop.xlane.xlu0 %347 }
 0x159   : > { %642 = vpow2.f32 %v586_v18  ;;  %v358_v23 = vadd.f32 %v354_v17, %v348_v22  ;;  %v359_v24 = vadd.f32 %v355_v20, %v351_v21 }
 0x15a   : > { %644 = vpow2.f32 %v585_v19 }
 0x15b   : > { %v587_v25 = vmul.f32 -1.442695, %v358_v23  ;;  %v588_v26 = vmul.f32 -1.442695, %v359_v24 }
 0x15c   : > { %v396_v39 = vpop.permute.xlu1 %395 }
 0x15d   : > { %646 = vpow2.f32 %v587_v25  ;;  %v410_v42 = vmul.f32 %v396_v39, %v838_v6  ;;  %v411_v45 = vmul.f32 %v396_v39, %v840_v7 }
 0x15e   : > { %648 = vpow2.f32 %v588_v26 }
 0x160   : > { %v391_v40 = vpop.permute.xlu0 %390  ;;  %v401_v41 = vpop.permute.xlu1 %400 }
 0x161   : > { %v408_v44 = vmul.f32 %v391_v40, %v828_v1  ;;  %v409_v46 = vmul.f32 %v391_v40, %v830_v2  ;;  %v412_v48 = vmul.f32 %v401_v41, %v832_v3  ;;  %v413_v50 = vmul.f32 %v401_v41, %v836_v5 }
 0x163   : > { %v416_v49 = vadd.f32 %v410_v42, %v408_v44  ;;  %v425_v51 = vadd.f32 %v411_v45, %v409_v46 }
 0x164   : > { %v406_v52 = vpop.permute.xlu1 %405 }
 0x165   : > { %v417_v53 = vadd.f32 %v416_v49, %v412_v48  ;;  %v414_v54 = vmul.f32 %v406_v52, %v844_v9  ;;  %v426_v55 = vadd.f32 %v425_v51, %v413_v50  ;;  %v415_v56 = vmul.f32 %v406_v52, %v846_v10 }
 0x166   : > { %v643_v27 = vpop.eup %642 }
 0x167   : > { %v645_v28 = vpop.eup %644  ;;  %v373_v30 = vadd.f32 1.0, %v643_v27  ;;  %v418_v57 = vadd.f32 %v417_v53, %v414_v54  ;;  %v427_v58 = vadd.f32 %v426_v55, %v415_v56 }
 0x168   : > { %v372_v29 = vadd.f32 1.0, %v645_v28  ;;  %v438_v12 = vpop.permute.xlu1 %437 }
 0x169   : > { %v419_v59 = vrot.slane %v418_v57, 4  ;;  %v428_v60 = vrot.slane %v427_v58, 4  ;;  %v443_v15 = vrot.slane %v438_v12, %v334_v47 }
 0x16a   : > { %650 = vrcp.f32 %v372_v29  ;;  %v647_v31 = vpop.eup %646 }
 0x16b   : > { %652 = vrcp.f32 %v373_v30  ;;  %v374_v32 = vadd.f32 1.0, %v647_v31  ;;  %v649_v33 = vpop.eup %648  ;;  %v420_v61 = vadd.f32 %v419_v59, %v418_v57  ;;  %v429_v62 = vadd.f32 %v428_v60, %v427_v58 }
 0x16c   : > { %v375_v34 = vadd.f32 1.0, %v649_v33 }
 0x16d   : > { %654 = vrcp.f32 %v374_v32  ;;  %v421_v63 = vrot.slane %v420_v61, 2  ;;  %v430_v0 = vrot.slane %v429_v62, 2 }
 0x16e   : > { %656 = vrcp.f32 %v375_v34 }
 0x16f   : > { %v422_v4 = vadd.f32 %v421_v63, %v420_v61  ;;  %v431_v8 = vadd.f32 %v430_v0, %v429_v62 }
 0x171   : > { %v423_v11 = vrot.slane %v422_v4, 1  ;;  %v432_v13 = vrot.slane %v431_v8, 1 }
 0x173   : > { %v424_v14 = vadd.f32 %v423_v11, %v422_v4  ;;  %v433_v16 = vadd.f32 %v432_v13, %v431_v8 }
 0x175   : > { %v444_v17 = vadd.f32 %v443_v15, %v424_v14  ;;  %v445_v18 = vadd.f32 %v443_v15, %v433_v16 }
 0x177   : > { %v651_v35 = vpop.eup %650  ;;  %v589_v19 = vmul.f32 -1.442695, %v444_v17  ;;  %v590_v20 = vmul.f32 -1.442695, %v445_v18 }
 0x178   : > { %460 = vperm.xlu1 %641, %v651_v35   ;;  %v653_v36 = vpop.eup %652 }
 0x179   : > { %658 = vpow2.f32 %v589_v19 }
 0x17a   : > { %v655_v37 = vpop.eup %654  ;;  %660 = vpow2.f32 %v590_v20 }
 0x17b   : > { %v657_v38 = vpop.eup %656 }
 0x17c   : > { %465 = vperm.xlu1 %641, %v653_v36  }
 0x180   : > { %470 = vperm.xlu1 %641, %v655_v37  }
 0x184   : > { %475 = vperm.xlu1 %641, %v657_v38  }
 0x186   : > { %v659_v21 = vpop.eup %658 }
 0x187   : > { %v661_v22 = vpop.eup %660  ;;  %v452_v23 = vadd.f32 1.0, %v659_v21 }
 0x188   : > { %v453_v24 = vadd.f32 1.0, %v661_v22 }
 0x189   : > { %662 = vrcp.f32 %v452_v23 }
 0x18a   : > { %664 = vrcp.f32 %v453_v24 }
 0x196   : > { %v663_v25 = vpop.eup %662 }
 0x197   : > { %v665_v43 = vpop.eup %664 }
 0x1f3   : > { %v461_v47 = vpop.permute.xlu1 %460 }
 0x1f4   : > { %v478_v26 = vadd.f32 %v663_v25, %v461_v47  ;;  %v479_v27 = vadd.f32 %v665_v43, %v461_v47 }
 0x1f6   : > { %v486_v28 = vmul.f32 %v478_v26, %v828_v1  ;;  %v487_v29 = vmul.f32 %v479_v27, %v830_v2 }
 0x1f7   : > { %v466_v30 = vpop.permute.xlu1 %465 }
 0x1f8   : > { %494 = vst [vmem:[%s273_s25] sm:$0xff] %v486_v28  ;;  %495 = vst [vmem:[%s273_s25 + $0x8] sm:$0xff] %v487_v29  ;;  %v480_v31 = vadd.f32 %v663_v25, %v466_v30  ;;  %v481_v32 = vadd.f32 %v665_v43, %v466_v30 }
 0x1fa   : > { %v488_v33 = vmul.f32 %v480_v31, %v838_v6  ;;  %v489_v34 = vmul.f32 %v481_v32, %v840_v7 }
 0x1fb   : > { %v471_v35 = vpop.permute.xlu1 %470 }
 0x1fc   : > { %496 = vst [vmem:[%s273_s25 + $0x10] sm:$0xff] %v488_v33  ;;  %497 = vst [vmem:[%s273_s25 + $0x18] sm:$0xff] %v489_v34  ;;  %v482_v36 = vadd.f32 %v663_v25, %v471_v35  ;;  %v483_v37 = vadd.f32 %v665_v43, %v471_v35 }
 0x1fe   : > { %v490_v1 = vmul.f32 %v482_v36, %v832_v3  ;;  %v491_v2 = vmul.f32 %v483_v37, %v836_v5 }
 0x1ff   : > { %v476_v38 = vpop.permute.xlu1 %475 }
 0x200   : > { %498 = vst [vmem:[%s273_s25 + $0x20] sm:$0xff] %v490_v1  ;;  %499 = vst [vmem:[%s273_s25 + $0x28] sm:$0xff] %v491_v2  ;;  %v484_v39 = vadd.f32 %v663_v25, %v476_v38  ;;  %v485_v6 = vadd.f32 %v665_v43, %v476_v38 }
 0x202   : > { %v492_v3 = vmul.f32 %v484_v39, %v844_v9  ;;  %v493_v5 = vmul.f32 %v485_v6, %v846_v10 }
 0x204   : > { %500 = vst [vmem:[%s273_s25 + $0x30] sm:$0xff] %v492_v3  ;;  %501 = vst [vmem:[%s273_s25 + $0x38] sm:$0xff] %v493_v5 }
 0x205   : > { %679 = shalt.err (!%p676_p3)
}
 0x206   : > { %s680_s20 = scalar_lea.hbm %s939_s15, 1024  ;;  %s684_s23 = scalar_lea.hbm %s994_s7, 2048 }
 0x207   : > { %p681_p4 = scmp.ne.s32.totalorder %s939_s15, %s680_s20  ;;  %p685_p9 = scmp.lt.s32.totalorder %s939_s15, %s994_s7 }
 0x208   : > { %p686_p10 = scmp.lt.s32.totalorder %s684_s23, %s680_s20 }
 0x209   : > { %p682_p7 = pnand %p681_p4, %p813_p5 }
 0x20a   : > { %p687_p11 = por %p686_p10, %p685_p9 }
 0x20b   : > { %p683_p8 = pneg %p682_p7 }
 0x20d   : > { %p688_p12 = pnand %p687_p11, %p683_p8 }
 0x20f   : > { %691 = shalt.err (!%p688_p12)
}
 0x210   : > { %s730_s30 = smov 256   ;;  %s731_s10 = smov 16  }
 0x211   : > { %598 = dma.vmem_to_hbm [thread:$0]  (%p813_p5), %s941_s9, 1024, %s939_s15, %s947_s6, %s730_s30, %s730_s30, %s731_s10  }
 0x212 PF: > { %p604_p13 = scmp.ge.s32.totalorder %s726_s29, 2  ;;  %s531_s14 = sand.u32 1, %s714_s26  }
 0x213   : > { %s532_s16 = scalar_lea.sflag [#allocation4], %s531_s14 }
 0x214   : > { %p601_p0 = pnand %p604_p13, %p817_p6 }
 0x216   : > { %p602_p1 = pneg %p601_p0 }
 0x218   : > { %709 = dma.done.wait (%p602_p1), %s532_s16, 1024  }
 0x219   : > { %711 = vsyncadd (%p602_p1), %s532_s16, 4294966272  ;;  %p19_p2 = scmp.ge.s32.totalorder %s800_s8, 4   ;;  %s997_s26 = smov %s718_s27 }
 0x21a   : > { %s998_s27 = smov %s722_s28  ;;  %s999_s28 = smov %s811_s11 }
 0x21b   : > { %s1000_s29 = smov %s800_s8  ;;  %21 = sbr.rel (!%p19_p2) target bundleno = 6 (0x6), region = 83 }
 0x220   :  { %537 = vsyncpa [#allocation4], 1 }
 0x221   :  { %539 = vsyncpa [#allocation4 + $0x1], 1 }

</bundles_post_ra>
